<compile_context>
chip_gen: v5e
topology: v5e:2x2
jax: 0.10.0
libtpu: 0.0.40
codegen_flags: <defaults>
</compile_context>

<pallas_src>
import functools

import jax
import jax.numpy as jnp
from jax import lax
from jax.experimental import pallas as pl
from jax.experimental.pallas import tpu as pltpu


def _round_up(x, m):
    return ((x + m - 1) // m) * m


def _remapper_kernel(x_ref, w_ref, b_ref, o_ref):
    # x_ref : [TB, K]        (VMEM) batch tile of activations
    # w_ref : [Npad, K]      (VMEM) weight in PyTorch layout, rows zero-padded
    # b_ref : [1, Npad]      (VMEM) bias row, zero-padded
    # o_ref : [TB, Npad]     (VMEM) lane-dense output tile
    acc = lax.dot_general(
        x_ref[...],
        w_ref[...],
        dimension_numbers=(((1,), (1,)), ((), ())),  # contract shared K axis
        preferred_element_type=jnp.float32,
    )
    o_ref[...] = (acc + b_ref[...]).astype(o_ref.dtype)


def prepare_remapper_params(weight, bias):
    """Pad nn.Linear params to a lane-dense (multiple-of-128) target width.

    In a real model this runs ONCE at load time, not per forward call.
    weight: [n_tgt, n_orig] (PyTorch layout), bias: [n_tgt].
    """
    n_tgt, n_orig = weight.shape
    n_tgt_pad = _round_up(n_tgt, 128)
    pad = n_tgt_pad - n_tgt
    if pad:
        weight = jnp.pad(weight, ((0, pad), (0, 0)))
        bias = jnp.pad(bias, (0, pad))
    return weight, bias.reshape(1, n_tgt_pad)


@functools.partial(jax.jit, static_argnames=("n_tgt",))
def _remap_padded(x, w_pad, b_pad, n_tgt):
    batch, n_orig = x.shape
    n_tgt_pad = w_pad.shape[0]

    # Batch tile: multiple of 8 (sublane), capped at 512 rows so
    # 2*(x tile) + 2*(out tile) + weight stays far under VMEM on v7x/v6e/v5e.
    tb = min(512, _round_up(batch, 8))
    batch_pad = _round_up(batch, tb)
    if batch_pad != batch:
        x = jnp.pad(x, ((0, batch_pad - batch), (0, 0)))

    grid = (batch_pad // tb,)

    cost = pl.CostEstimate(
        flops=2 * batch_pad * n_orig * n_tgt_pad,
        transcendentals=0,
        bytes_accessed=4 * (batch_pad * n_orig
                            + n_tgt_pad * n_orig
                            + n_tgt_pad
                            + batch_pad * n_tgt_pad),
    )

    out_pad = pl.pallas_call(
        _remapper_kernel,
        out_shape=jax.ShapeDtypeStruct((batch_pad, n_tgt_pad), x.dtype),
        grid=grid,
        in_specs=[
            # x: one batch tile per grid step.
            pl.BlockSpec((tb, n_orig), lambda i: (i, 0)),
            # weight/bias: constant block index -> fetched once, VMEM-resident.
            pl.BlockSpec((n_tgt_pad, n_orig), lambda i: (0, 0)),
            pl.BlockSpec((1, n_tgt_pad), lambda i: (0, 0)),
        ],
        out_specs=pl.BlockSpec((tb, n_tgt_pad), lambda i: (i, 0)),
        compiler_params=pltpu.CompilerParams(
            dimension_semantics=("parallel",),  # batch tiles are independent
        ),
        cost_estimate=cost,
    )(x, w_pad, b_pad)

    # Slice padded rows / lanes back to the logical shape.
    return out_pad[:batch, :n_tgt]


def multi_label_remapper(x, weight, bias):
    """Equivalent of MultiLabelRemapper.forward (logits = x @ W^T + b).

    x:      [batch, num_labels_original]  float32
    weight: [num_labels_target, num_labels_original]  (PyTorch nn.Linear layout)
    bias:   [num_labels_target]
    returns [batch, num_labels_target]
    """
    w_pad, b_pad = prepare_remapper_params(weight, bias)  # hoist to load time in practice
    return _remap_padded(x, w_pad, b_pad, weight.shape[0])


if __name__ == "__main__":
    # Module config: nn.Linear(num_labels_original, num_labels_target)
    num_labels_original = 32
    num_labels_target = 8
    batch = 4

    key = jax.random.PRNGKey(0)
    kx, kw, kb = jax.random.split(key, 3)

    x = jax.random.normal(kx, (batch, num_labels_original), dtype=jnp.float32)

    # Deterministic parameter init mimicking nn.Linear default:
    # uniform(-1/sqrt(fan_in), 1/sqrt(fan_in))
    bound = 1.0 / jnp.sqrt(jnp.float32(num_labels_original))
    weight = jax.random.uniform(
        kw, (num_labels_target, num_labels_original),
        minval=-bound, maxval=bound, dtype=jnp.float32)
    bias = jax.random.uniform(
        kb, (num_labels_target,),
        minval=-bound, maxval=bound, dtype=jnp.float32)

    logits = multi_label_remapper(x, weight, bias)
    jax.block_until_ready(logits)

    # Correctness check against plain-JAX reference of the PyTorch forward.
    ref = x @ weight.T + bias
    assert logits.shape == (batch, num_labels_target)
    assert jnp.allclose(logits, ref, atol=1e-5, rtol=1e-5)

    print("KERNEL_OK")
</pallas_src>

<mosaic_0001>
module attributes {stable_mosaic.version = 11 : i64} {
  func.func @_remapper_kernel(%arg0: i32, %arg1: memref<8x32xf32, #tpu.memory_space<vmem>>, %arg2: memref<128x32xf32, #tpu.memory_space<vmem>>, %arg3: memref<1x128xf32, #tpu.memory_space<vmem>>, %arg4: memref<8x128xf32, #tpu.memory_space<vmem>>) attributes {dimension_semantics = [#tpu.dimension_semantics<parallel>], iteration_bounds = array<i64: 1>, scalar_prefetch = 0 : i64, scratch_operands = 0 : i64, tpu.core_type = #tpu.core_type<tc>, window_params = [{transform_indices = @transform_0, window_bounds = array<i64: 8, 32>}, {pipeline_mode = #tpu.pipeline_mode<synchronous>, transform_indices = @transform_1, window_bounds = array<i64: 128, 32>}, {pipeline_mode = #tpu.pipeline_mode<synchronous>, transform_indices = @transform_2, window_bounds = array<i64: 1, 128>}, {transform_indices = @transform_3, window_bounds = array<i64: 8, 128>}]} {
    %c0 = arith.constant 0 : index
    %c0_0 = arith.constant 0 : index
    %0 = vector.load %arg1[%c0, %c0_0] : memref<8x32xf32, #tpu.memory_space<vmem>>, vector<8x32xf32>
    %c0_1 = arith.constant 0 : index
    %c0_2 = arith.constant 0 : index
    %1 = vector.load %arg2[%c0_1, %c0_2] : memref<128x32xf32, #tpu.memory_space<vmem>>, vector<128x32xf32>
    %cst = arith.constant dense<0.000000e+00> : vector<8x128xf32>
    %2 = tpu.matmul %0, %1, %cst {dimension_numbers = #tpu.dot_dimension_numbers<[1], [1], [0], [0], [0, 0, 1, 0], [], []>} : vector<8x32xf32>, vector<128x32xf32>, vector<8x128xf32> -> vector<8x128xf32>
    %c0_3 = arith.constant 0 : index
    %c0_4 = arith.constant 0 : index
    %3 = vector.load %arg3[%c0_3, %c0_4] : memref<1x128xf32, #tpu.memory_space<vmem>>, vector<1x128xf32>
    %4 = vector.broadcast %3 : vector<1x128xf32> to vector<8x128xf32>
    %5 = arith.addf %2, %4 : vector<8x128xf32>
    %c0_5 = arith.constant 0 : index
    %c0_6 = arith.constant 0 : index
    %6 = vector.load %arg4[%c0_5, %c0_6] : memref<8x128xf32, #tpu.memory_space<vmem>>, vector<8x128xf32>
    tpu.vector_store %arg4[%c0_5, %c0_6], %5 {strides = array<i32>} : memref<8x128xf32, #tpu.memory_space<vmem>>, vector<8x128xf32>,
    return
  }
  func.func @transform_0(%arg0: i32) -> (i32, i32) {
    %c0_i32 = arith.constant 0 : i32
    %c0_i32_0 = arith.constant 0 : i32
    return %arg0, %c0_i32 : i32, i32
  }
  func.func @transform_1(%arg0: i32) -> (i32, i32) {
    %c0_i32 = arith.constant 0 : i32
    %c0_i32_0 = arith.constant 0 : i32
    %c0_i32_1 = arith.constant 0 : i32
    return %c0_i32, %c0_i32_0 : i32, i32
  }
  func.func @transform_2(%arg0: i32) -> (i32, i32) {
    %c0_i32 = arith.constant 0 : i32
    %c0_i32_0 = arith.constant 0 : i32
    %c0_i32_1 = arith.constant 0 : i32
    return %c0_i32, %c0_i32_0 : i32, i32
  }
  func.func @transform_3(%arg0: i32) -> (i32, i32) {
    %c0_i32 = arith.constant 0 : i32
    %c0_i32_0 = arith.constant 0 : i32
    return %arg0, %c0_i32 : i32, i32
  }
}

</mosaic_0001>

<bundles_post_ra>
// kernel: _remap_padded.1
= control target key start
LH: loop header
LB: loop body
LE: loop exit
PB: predicated region body
PF: predicated region fallthrough
CT: control target
= control target key end

     0   :  { %vm35_vm0 = vcmask 261120   ;;  %s224_s1 = inlined_call_operand.vmem [shape: f32[128,32], index: 1, kind: input, shape index: {}]   ;;  %s225_s2 = inlined_call_operand.vmem [shape: f32[1,128], index: 2, kind: input, shape index: {}]   ;;  %s226_s0 = inlined_call_operand.vmem [shape: f32[8,32], index: 0, kind: input, shape index: {}]   ;;  %s227_s3 = inlined_call_operand.vmem [shape: f32[8,128], index: 3, kind: output, shape index: {}]  }
   0x1   :  { %v30_v0 = vld [vmem:[%s224_s1 + $0x78] sm:$0xff]  ;;  %v29_v1 = vld [vmem:[%s224_s1 + $0x70] sm:$0xff]  ;;  %v28_v2 = vld [vmem:[%s224_s1 + $0x68] sm:$0xff] }
   0x2   :  { %112 = vmatpush.xpose.msk.msra.mxu0 %vm35_vm0, %v30_v0  ;;  %v27_v3 = vld [vmem:[%s224_s1 + $0x60] sm:$0xff]  ;;  %v26_v4 = vld [vmem:[%s224_s1 + $0x58] sm:$0xff]  ;;  %v25_v5 = vld [vmem:[%s224_s1 + $0x50] sm:$0xff] }
   0x3   :  { %v24_v6 = vld [vmem:[%s224_s1 + $0x48] sm:$0xff]  ;;  %v23_v7 = vld [vmem:[%s224_s1 + $0x40] sm:$0xff]  ;;  %v22_v8 = vld [vmem:[%s224_s1 + $0x38] sm:$0xff] }
   0x4   :  { %v21_v9 = vld [vmem:[%s224_s1 + $0x30] sm:$0xff]  ;;  %v20_v10 = vld [vmem:[%s224_s1 + $0x28] sm:$0xff]  ;;  %v19_v11 = vld [vmem:[%s224_s1 + $0x20] sm:$0xff] }
   0x5   :  { %v18_v12 = vld [vmem:[%s224_s1 + $0x18] sm:$0xff]  ;;  %v17_v13 = vld [vmem:[%s224_s1 + $0x10] sm:$0xff]  ;;  %v16_v14 = vld [vmem:[%s224_s1 + $0x8] sm:$0xff] }
   0x6   :  { %113 = vmatpush.xpose.msk.msra.mxu0 %vm35_vm0, %v29_v1  ;;  %v15_v15 = vld [vmem:[%s224_s1] sm:$0xff] }
   0x7   :  { %v14_v16 = vld [vmem:[%s226_s0] sm:$0xff] }
   0x8   :  { %v129_v17 = vld [vmem:[%s225_s2] ss:$0 sm:$0xff] }
   0xa   :  { %114 = vmatpush.xpose.msk.msra.mxu0 %vm35_vm0, %v28_v2 }
   0xe   :  { %115 = vmatpush.xpose.msk.msra.mxu0 %vm35_vm0, %v27_v3 }
  0x12   :  { %116 = vmatpush.xpose.msk.msra.mxu0 %vm35_vm0, %v26_v4 }
  0x16   :  { %117 = vmatpush.xpose.msk.msra.mxu0 %vm35_vm0, %v25_v5 }
  0x1a   :  { %118 = vmatpush.xpose.msk.msra.mxu0 %vm35_vm0, %v24_v6 }
  0x1e   :  { %119 = vmatpush.xpose.msk.msra.mxu0 %vm35_vm0, %v23_v7 }
  0x22   :  { %120 = vmatpush.xpose.msk.msra.mxu0 %vm35_vm0, %v22_v8 }
  0x26   :  { %121 = vmatpush.xpose.msk.msra.mxu0 %vm35_vm0, %v21_v9 }
  0x2a   :  { %122 = vmatpush.xpose.msk.msra.mxu0 %vm35_vm0, %v20_v10 }
  0x2e   :  { %123 = vmatpush.xpose.msk.msra.mxu0 %vm35_vm0, %v19_v11 }
  0x32   :  { %124 = vmatpush.xpose.msk.msra.mxu0 %vm35_vm0, %v18_v12 }
  0x36   :  { %125 = vmatpush.xpose.msk.msra.mxu0 %vm35_vm0, %v17_v13 }
  0x3a   :  { %126 = vmatpush.xpose.msk.msra.mxu0 %vm35_vm0, %v16_v14 }
  0x3e   :  { %127 = vmatpush.xpose.msk.msra.mxu0 %vm35_vm0, %v15_v15 }
  0x41   :  { %128 = vmatmul.msk.f32.vlgmr.msra.gmra.mxu0 %vm35_vm0, %v14_v16 }
  0xbe   :  { %v104_v18 = vpop.f32.mrf.mxu0 }
  0xbf   :  { %v105_v19 = vadd.f32 %v129_v17, %v104_v18 }
  0xc1   :  { %107 = vst [vmem:[%s227_s3] sm:$0xff] %v105_v19 }

</bundles_post_ra>
